<compile_context>
chip_gen: v5e
topology: v5e:2x2
jax: 0.10.0
libtpu: 0.0.40
codegen_flags: <defaults>
</compile_context>

<pallas_src>
import jax
import jax.numpy as jnp
from jax.experimental import pallas as pl
from jax.experimental.pallas import tpu as pltpu

IN_F = 15 * 9       # 135
IN_PAD_BF16 = 256   # lane-aligned contraction depth for the bf16 MXU path
H1 = 256
H2 = 128
OUT_F = 12
BN_EPS = 1e-5


def _round_up(x, m):
    return (x + m - 1) // m * m


def _mlp_kernel(x_ref, w1_ref, b1_ref, w2_ref, b2_ref, w3_ref, b3_ref, out_ref):
    """Fused (Linear -> ReLU) x2 -> Linear; BNs pre-folded into W2/b2, W3/b3."""
    cdt = w1_ref.dtype  # matmul operand dtype (bf16 by default, or f32)

    # ---- Linear 1 + ReLU (BN1 folded into W2/b2) ---------------------------
    h = jnp.dot(x_ref[...], w1_ref[...],
                preferred_element_type=jnp.float32) + b1_ref[...]
    h = jnp.maximum(h, 0.0).astype(cdt)
    # Dropout(0.3): identity in eval mode.

    # ---- Linear 2 + ReLU (BN2 folded into W3/b3) ---------------------------
    h = jnp.dot(h, w2_ref[...],
                preferred_element_type=jnp.float32) + b2_ref[...]
    h = jnp.maximum(h, 0.0).astype(cdt)
    # Dropout(0.3): identity in eval mode.

    # ---- Linear 3: true 12-wide output (no 128-lane pad on the writeback) --
    out_ref[...] = (jnp.dot(h, w3_ref[...],
                            preferred_element_type=jnp.float32)
                    + b3_ref[...]).astype(out_ref.dtype)


def _fold_params(params, compute_dtype, in_pad):
    """Host-side fold of eval-mode BatchNorms into the adjacent Linear layers."""
    s1 = params["g1"] / jnp.sqrt(params["v1"] + BN_EPS)   # (1, H1)
    t1 = params["be1"] - params["m1"] * s1                 # (1, H1)
    s2 = params["g2"] / jnp.sqrt(params["v2"] + BN_EPS)   # (1, H2)
    t2 = params["be2"] - params["m2"] * s2                 # (1, H2)

    w1 = params["w1"]
    if in_pad != IN_F:  # zero-pad contraction depth (bf16 path): no-op rows
        w1 = jnp.zeros((in_pad, H1), jnp.float32).at[:IN_F, :].set(w1)
    b1 = params["b1"]
    w2 = params["w2"] * s1.reshape(H1, 1)                  # diag(s1) @ W2
    b2 = t1 @ params["w2"] + params["b2"]
    w3 = params["w3"] * s2.reshape(H2, 1)                  # diag(s2) @ W3
    b3 = t2 @ params["w3"] + params["b3"]

    # Matmul operands in compute_dtype; biases / epilogue stay f32
    # (f32 accumulation; v5e VPU has no bf16 support).
    return (w1.astype(compute_dtype), b1.astype(jnp.float32),
            w2.astype(compute_dtype), b2.astype(jnp.float32),
            w3.astype(compute_dtype), b3.astype(jnp.float32))


def _select_tiling(B, tile_b_max):
    """Pick (tile_b, padded_B, n_tiles).

    tile_b is a multiple of 8 derived from B (so padding waste is < 8 rows per
    tile), and the grid has >= 2 steps whenever the batch allows it so the
    "parallel" grid axis can be split across v7x's two TensorCores.
    """
    b8 = _round_up(max(B, 1), 8)
    n_tiles = pl.cdiv(b8, tile_b_max)
    if b8 >= 16:                       # enough rows for two 8-row tiles
        n_tiles = max(n_tiles, 2)
    tile_b = _round_up(pl.cdiv(b8, n_tiles), 8)
    n_tiles = pl.cdiv(b8, tile_b)
    return tile_b, tile_b * n_tiles, n_tiles


def net_forward(x, params, *, tile_b=4096, compute_dtype=jnp.bfloat16):
    """x: (B, 15, 9) -> logits (B, 12) float32."""
    B = x.shape[0]
    is_bf16 = jnp.dtype(compute_dtype) == jnp.dtype(jnp.bfloat16)
    in_pad = IN_PAD_BF16 if is_bf16 else IN_F

    tile_b, Bp, n_tiles = _select_tiling(B, tile_b)

    # nn.Flatten() (row-major), pad batch to tile multiple and K to in_pad.
    x_flat = x.reshape(B, IN_F)
    x_flat = jnp.pad(x_flat, ((0, Bp - B), (0, in_pad - IN_F)))
    x_flat = x_flat.astype(compute_dtype)

    w1, b1, w2, b2, w3, b3 = _fold_params(params, compute_dtype, in_pad)

    itemsize = jnp.dtype(compute_dtype).itemsize
    param_bytes = ((w1.size + w2.size + w3.size) * itemsize
                   + (b1.size + b2.size + b3.size) * 4)
    cost = pl.CostEstimate(
        flops=2 * Bp * (in_pad * H1 + H1 * H2 + H2 * OUT_F),
        transcendentals=0,
        bytes_accessed=Bp * (in_pad * itemsize + OUT_F * 4) + param_bytes,
    )

    # Double-buffered x/out tiles + resident weights; raise the scoped VMEM
    # limit only if needed, leaving headroom under v7x's 64 MiB physical VMEM.
    vmem_est = (2 * (tile_b * in_pad * itemsize + tile_b * OUT_F * 4)
                + 2 * param_bytes + (1 << 20))
    vmem_limit = (min(vmem_est + (8 << 20), 60 << 20)
                  if vmem_est > (30 << 20) else None)

    def resident(shape):  # weights/biases: same block for every grid step
        return pl.BlockSpec(shape, lambda i: (0, 0))

    out = pl.pallas_call(
        _mlp_kernel,
        out_shape=jax.ShapeDtypeStruct((Bp, OUT_F), jnp.float32),
        grid=(n_tiles,),
        in_specs=[
            pl.BlockSpec((tile_b, in_pad), lambda i: (i, 0)),  # streamed x
            resident((in_pad, H1)), resident((1, H1)),
            resident((H1, H2)), resident((1, H2)),
            resident((H2, OUT_F)), resident((1, OUT_F)),
        ],
        out_specs=pl.BlockSpec((tile_b, OUT_F), lambda i: (i, 0)),
        compiler_params=pltpu.CompilerParams(
            dimension_semantics=("parallel",),   # megacore split on v7x
            vmem_limit_bytes=vmem_limit),
        cost_estimate=cost,
    )(x_flat, w1, b1, w2, b2, w3, b3)

    return out[:B]


def net_pred(x, params, confidence_thr=0.75, **fwd_kwargs):
    """Equivalent of Net.pred: (predictions, confidence). Glue in plain JAX."""
    logits = net_forward(x, params, **fwd_kwargs)
    probs = jax.nn.softmax(logits, axis=1)
    confidence = jnp.max(probs, axis=1)
    predictions = jnp.argmax(probs, axis=1).astype(jnp.int32)
    predictions = jnp.where(confidence < confidence_thr, -1, predictions)
    return predictions, confidence


def init_params(key):
    """Deterministic parameter init (shapes from Net.__init__, PyTorch defaults)."""
    ks = jax.random.split(key, 6)

    def linear(kw, kb, fan_in, fan_out):
        bound = 1.0 / jnp.sqrt(fan_in)
        w = jax.random.uniform(kw, (fan_in, fan_out), jnp.float32, -bound, bound)
        b = jax.random.uniform(kb, (1, fan_out), jnp.float32, -bound, bound)
        return w, b

    w1, b1 = linear(ks[0], ks[1], IN_F, H1)
    w2, b2 = linear(ks[2], ks[3], H1, H2)
    w3, b3 = linear(ks[4], ks[5], H2, OUT_F)

    return dict(
        w1=w1, b1=b1,
        g1=jnp.ones((1, H1), jnp.float32), be1=jnp.zeros((1, H1), jnp.float32),
        m1=jnp.zeros((1, H1), jnp.float32), v1=jnp.ones((1, H1), jnp.float32),
        w2=w2, b2=b2,
        g2=jnp.ones((1, H2), jnp.float32), be2=jnp.zeros((1, H2), jnp.float32),
        m2=jnp.zeros((1, H2), jnp.float32), v2=jnp.ones((1, H2), jnp.float32),
        w3=w3, b3=b3,
    )


if __name__ == "__main__":
    key = jax.random.PRNGKey(0)
    k_x, k_p, k_bn = jax.random.split(key, 3)

    B = 8
    x = jax.random.normal(k_x, (B, 15, 9), dtype=jnp.float32)
    params = init_params(k_p)

    # Non-trivial BN running statistics so the host-side folding is exercised.
    kb = jax.random.split(k_bn, 8)
    params.update(
        g1=jax.random.uniform(kb[0], (1, H1), jnp.float32, 0.5, 1.5),
        be1=0.1 * jax.random.normal(kb[1], (1, H1), jnp.float32),
        m1=0.1 * jax.random.normal(kb[2], (1, H1), jnp.float32),
        v1=jax.random.uniform(kb[3], (1, H1), jnp.float32, 0.5, 1.5),
        g2=jax.random.uniform(kb[4], (1, H2), jnp.float32, 0.5, 1.5),
        be2=0.1 * jax.random.normal(kb[5], (1, H2), jnp.float32),
        m2=0.1 * jax.random.normal(kb[6], (1, H2), jnp.float32),
        v2=jax.random.uniform(kb[7], (1, H2), jnp.float32, 0.5, 1.5),
    )

    # Pure-JAX reference (unfolded BN formulation).
    def ref_forward(xx, p):
        b = xx.shape[0]
        h = xx.reshape(b, IN_F) @ p["w1"] + p["b1"]
        h = jnp.maximum(h, 0.0)
        h = (h - p["m1"]) / jnp.sqrt(p["v1"] + BN_EPS) * p["g1"] + p["be1"]
        h = h @ p["w2"] + p["b2"]
        h = jnp.maximum(h, 0.0)
        h = (h - p["m2"]) / jnp.sqrt(p["v2"] + BN_EPS) * p["g2"] + p["be2"]
        return h @ p["w3"] + p["b3"]

    ref = ref_forward(x, params)

    # f32 operand path: tight tolerance.
    logits_f32 = jax.block_until_ready(
        net_forward(x, params, compute_dtype=jnp.float32))
    assert logits_f32.shape == (B, OUT_F) and logits_f32.dtype == jnp.float32
    assert jnp.allclose(logits_f32, ref, atol=1e-4, rtol=1e-4), "f32 kernel mismatch"

    # Default bf16 MXU path (f32 accumulation, K padded to 256): looser tolerance.
    logits = jax.block_until_ready(net_forward(x, params))
    assert logits.shape == (B, OUT_F) and logits.dtype == jnp.float32
    assert jnp.allclose(logits, ref, atol=5e-2, rtol=5e-2), "bf16 kernel mismatch"

    # Ragged batch: exercises the >=2-step grid + minimal-padding tile selection.
    B2 = 13
    x2 = jax.random.normal(jax.random.PRNGKey(7), (B2, 15, 9), dtype=jnp.float32)
    logits2 = jax.block_until_ready(net_forward(x2, params))
    assert logits2.shape == (B2, OUT_F)
    assert jnp.allclose(logits2, ref_forward(x2, params), atol=5e-2, rtol=5e-2), \
        "ragged-batch kernel mismatch"

    # Exercise pred() path too (softmax/argmax glue stays in plain JAX,
    # now over a (B,12) slab instead of (B,128)).
    preds, conf = net_pred(x, params)
    jax.block_until_ready((preds, conf))
    assert preds.shape == (B,) and conf.shape == (B,)

    print("KERNEL_OK")
</pallas_src>

<mosaic_0001>
module attributes {stable_mosaic.version = 11 : i64} {
  func.func @_mlp_kernel(%arg0: i32, %arg1: memref<8x135xf32, #tpu.memory_space<vmem>>, %arg2: memref<135x256xf32, #tpu.memory_space<vmem>>, %arg3: memref<1x256xf32, #tpu.memory_space<vmem>>, %arg4: memref<256x128xf32, #tpu.memory_space<vmem>>, %arg5: memref<1x128xf32, #tpu.memory_space<vmem>>, %arg6: memref<128x12xf32, #tpu.memory_space<vmem>>, %arg7: memref<1x12xf32, #tpu.memory_space<vmem>>, %arg8: memref<8x12xf32, #tpu.memory_space<vmem>>) attributes {dimension_semantics = [#tpu.dimension_semantics<parallel>], iteration_bounds = array<i64: 1>, scalar_prefetch = 0 : i64, scratch_operands = 0 : i64, tpu.core_type = #tpu.core_type<tc>, window_params = [{transform_indices = @transform_0, window_bounds = array<i64: 8, 135>}, {pipeline_mode = #tpu.pipeline_mode<synchronous>, transform_indices = @transform_1, window_bounds = array<i64: 135, 256>}, {pipeline_mode = #tpu.pipeline_mode<synchronous>, transform_indices = @transform_2, window_bounds = array<i64: 1, 256>}, {pipeline_mode = #tpu.pipeline_mode<synchronous>, transform_indices = @transform_3, window_bounds = array<i64: 256, 128>}, {pipeline_mode = #tpu.pipeline_mode<synchronous>, transform_indices = @transform_4, window_bounds = array<i64: 1, 128>}, {pipeline_mode = #tpu.pipeline_mode<synchronous>, transform_indices = @transform_5, window_bounds = array<i64: 128, 12>}, {pipeline_mode = #tpu.pipeline_mode<synchronous>, transform_indices = @transform_6, window_bounds = array<i64: 1, 12>}, {transform_indices = @transform_7, window_bounds = array<i64: 8, 12>}]} {
    %c0 = arith.constant 0 : index
    %c0_0 = arith.constant 0 : index
    %0 = vector.load %arg1[%c0, %c0_0] : memref<8x135xf32, #tpu.memory_space<vmem>>, vector<8x135xf32>
    %c0_1 = arith.constant 0 : index
    %c0_2 = arith.constant 0 : index
    %1 = vector.load %arg2[%c0_1, %c0_2] : memref<135x256xf32, #tpu.memory_space<vmem>>, vector<135x256xf32>
    %cst = arith.constant dense<0.000000e+00> : vector<8x256xf32>
    %2 = tpu.matmul %0, %1, %cst {dimension_numbers = #tpu.dot_dimension_numbers<[1], [0], [0], [1], [0, 0, 1, 1], [], []>} : vector<8x135xf32>, vector<135x256xf32>, vector<8x256xf32> -> vector<8x256xf32>
    %c0_3 = arith.constant 0 : index
    %c0_4 = arith.constant 0 : index
    %3 = vector.load %arg3[%c0_3, %c0_4] : memref<1x256xf32, #tpu.memory_space<vmem>>, vector<1x256xf32>
    %4 = vector.broadcast %3 : vector<1x256xf32> to vector<8x256xf32>
    %5 = arith.addf %2, %4 : vector<8x256xf32>
    %cst_5 = arith.constant 0.000000e+00 : f32
    %6 = vector.broadcast %cst_5 : f32 to vector<8x256xf32>
    %7 = arith.maximumf %5, %6 : vector<8x256xf32>
    %c0_6 = arith.constant 0 : index
    %c0_7 = arith.constant 0 : index
    %8 = vector.load %arg4[%c0_6, %c0_7] : memref<256x128xf32, #tpu.memory_space<vmem>>, vector<256x128xf32>
    %cst_8 = arith.constant dense<0.000000e+00> : vector<8x128xf32>
    %9 = tpu.matmul %7, %8, %cst_8 {dimension_numbers = #tpu.dot_dimension_numbers<[1], [0], [0], [1], [0, 0, 1, 1], [], []>} : vector<8x256xf32>, vector<256x128xf32>, vector<8x128xf32> -> vector<8x128xf32>
    %c0_9 = arith.constant 0 : index
    %c0_10 = arith.constant 0 : index
    %10 = vector.load %arg5[%c0_9, %c0_10] : memref<1x128xf32, #tpu.memory_space<vmem>>, vector<1x128xf32>
    %11 = vector.broadcast %10 : vector<1x128xf32> to vector<8x128xf32>
    %12 = arith.addf %9, %11 : vector<8x128xf32>
    %cst_11 = arith.constant 0.000000e+00 : f32
    %13 = vector.broadcast %cst_11 : f32 to vector<8x128xf32>
    %14 = arith.maximumf %12, %13 : vector<8x128xf32>
    %c0_12 = arith.constant 0 : index
    %c0_13 = arith.constant 0 : index
    %15 = vector.load %arg6[%c0_12, %c0_13] : memref<128x12xf32, #tpu.memory_space<vmem>>, vector<128x12xf32>
    %cst_14 = arith.constant dense<0.000000e+00> : vector<8x12xf32>
    %16 = tpu.matmul %14, %15, %cst_14 {dimension_numbers = #tpu.dot_dimension_numbers<[1], [0], [0], [1], [0, 0, 1, 1], [], []>} : vector<8x128xf32>, vector<128x12xf32>, vector<8x12xf32> -> vector<8x12xf32>
    %c0_15 = arith.constant 0 : index
    %c0_16 = arith.constant 0 : index
    %17 = vector.load %arg7[%c0_15, %c0_16] : memref<1x12xf32, #tpu.memory_space<vmem>>, vector<1x12xf32>
    %18 = vector.broadcast %17 : vector<1x12xf32> to vector<8x12xf32>
    %19 = arith.addf %16, %18 : vector<8x12xf32>
    %c0_17 = arith.constant 0 : index
    %c0_18 = arith.constant 0 : index
    %20 = vector.load %arg8[%c0_17, %c0_18] : memref<8x12xf32, #tpu.memory_space<vmem>>, vector<8x12xf32>
    tpu.vector_store %arg8[%c0_17, %c0_18], %19 {strides = array<i32>} : memref<8x12xf32, #tpu.memory_space<vmem>>, vector<8x12xf32>,
    return
  }
  func.func @transform_0(%arg0: i32) -> (i32, i32) {
    %c0_i32 = arith.constant 0 : i32
    %c0_i32_0 = arith.constant 0 : i32
    return %arg0, %c0_i32 : i32, i32
  }
  func.func @transform_1(%arg0: i32) -> (i32, i32) {
    %c0_i32 = arith.constant 0 : i32
    %c0_i32_0 = arith.constant 0 : i32
    %c0_i32_1 = arith.constant 0 : i32
    return %c0_i32, %c0_i32_0 : i32, i32
  }
  func.func @transform_2(%arg0: i32) -> (i32, i32) {
    %c0_i32 = arith.constant 0 : i32
    %c0_i32_0 = arith.constant 0 : i32
    %c0_i32_1 = arith.constant 0 : i32
    return %c0_i32, %c0_i32_0 : i32, i32
  }
  func.func @transform_3(%arg0: i32) -> (i32, i32) {
    %c0_i32 = arith.constant 0 : i32
    %c0_i32_0 = arith.constant 0 : i32
    %c0_i32_1 = arith.constant 0 : i32
    return %c0_i32, %c0_i32_0 : i32, i32
  }
  func.func @transform_4(%arg0: i32) -> (i32, i32) {
    %c0_i32 = arith.constant 0 : i32
    %c0_i32_0 = arith.constant 0 : i32
    %c0_i32_1 = arith.constant 0 : i32
    return %c0_i32, %c0_i32_0 : i32, i32
  }
  func.func @transform_5(%arg0: i32) -> (i32, i32) {
    %c0_i32 = arith.constant 0 : i32
    %c0_i32_0 = arith.constant 0 : i32
    %c0_i32_1 = arith.constant 0 : i32
    return %c0_i32, %c0_i32_0 : i32, i32
  }
  func.func @transform_6(%arg0: i32) -> (i32, i32) {
    %c0_i32 = arith.constant 0 : i32
    %c0_i32_0 = arith.constant 0 : i32
    %c0_i32_1 = arith.constant 0 : i32
    return %c0_i32, %c0_i32_0 : i32, i32
  }
  func.func @transform_7(%arg0: i32) -> (i32, i32) {
    %c0_i32 = arith.constant 0 : i32
    %c0_i32_0 = arith.constant 0 : i32
    return %arg0, %c0_i32 : i32, i32
  }
}

</mosaic_0001>

<bundles_post_ra>
// kernel: tpu_custom_call.1
= control target key start
LH: loop header
LB: loop body
LE: loop exit
PB: predicated region body
PF: predicated region fallthrough
CT: control target
= control target key end

     0   :  { %12 = vsyncpa [#allocation3], 0  ;;  %s545_s0 = inlined_call_operand.vmem [shape: f32[8,135], index: 0, kind: input, shape index: {}]   ;;  %s546_s1 = inlined_call_operand.hbm [shape: f32[135,256], index: 1, kind: input, shape index: {}]   ;;  %s547_s2 = inlined_call_operand.vmem [shape: f32[1,256], index: 2, kind: input, shape index: {}]   ;;  %s548_s3 = inlined_call_operand.hbm [shape: f32[256,128], index: 3, kind: input, shape index: {}]   ;;  %s549_s4 = inlined_call_operand.vmem [shape: f32[1,128], index: 4, kind: input, shape index: {}]   ;;  %s550_s5 = inlined_call_operand.vmem [shape: f32[128,12], index: 5, kind: input, shape index: {}]   ;;  %s551_s6 = inlined_call_operand.vmem [shape: f32[1,12], index: 6, kind: input, shape index: {}]   ;;  %s552_s7 = inlined_call_operand.hbm [shape: f32[8,12], index: 7, kind: output, shape index: {}]  }
   0x1   :  { %13 = vsyncpa [#allocation6], 0 }
   0x2   :  { %14 = vsyncpa [#allocation4], 0  ;;  %s21_s26 = sshll.u32 %s546_s1, 4  ;;  %s422_s27 = smov [#allocation2]   ;;  %s22_s26 = int_to_ptr.hbm [resolvable:$true] %s21_s26 }
   0x3   :  { %s23_s28 = sshll.u32 %s422_s27, 4  ;;  %s36_s8 = sshll.u32 %s548_s3, 4  ;;  %s24_s28 = int_to_ptr.vmem [resolvable:$true] %s23_s28  ;;  %s37_s8 = int_to_ptr.hbm [resolvable:$true] %s36_s8 }
   0x4   :  { %s423_s9 = smov 256   ;;  %s424_s10 = smov 16  }
   0x5   :  { %29 = dma.hbm_to_vmem [thread:$0]  %s22_s26, 4352, %s24_s28, [#allocation3], %s423_s9, %s423_s9, %s424_s10  }
   0x6   :  { %s425_s11 = smov [#allocation5]   ;;  %s426_s13 = smov 128  }
   0x7   :  { %s38_s12 = sshll.u32 %s425_s11, 4  ;;  %s427_s14 = smov 8   ;;  %s39_s12 = int_to_ptr.vmem [resolvable:$true] %s38_s12 }
   0x8   :  { %44 = dma.hbm_to_vmem [thread:$0]  %s37_s8, 4096, %s39_s12, [#allocation6], %s426_s13, %s426_s13, %s427_s14  }
   0x9   :  { %416 = dma.done.wait [#allocation3], 4352  }
   0xa   :  { %417 = vsyncadd [#allocation3], 4294962944 }
   0xb   :  { %418 = dma.done.wait [#allocation6], 4096  }
   0xc   :  { %419 = vsyncadd [#allocation6], 4294963200  ;;  %v92_v0 = vld [vmem:[#allocation2 + $0xf8] sm:$0xff]  ;;  %v90_v1 = vld [vmem:[#allocation2 + $0xe8] sm:$0xff]  ;;  %vm105_vm0 = vcmask 1046528   ;;  %vm101_vm1 = vcmask 56320  }
   0xd   :  { %152 = vmatpush.msra.mxu2 %v92_v0  ;;  %v91_v2 = vld [vmem:[#allocation2 + $0xf0] sm:$0xff]  ;;  %v88_v3 = vld [vmem:[#allocation2 + $0xd8] sm:$0xff]  ;;  %v89_v4 = vld [vmem:[#allocation2 + $0xe0] sm:$0xff]  ;;  %s428_s27 = smov [#allocation7]   ;;  %vm311_vm2 = vcmask 97280  }
   0xe   :  { %112 = vmatpush.msra.mxu0 %v91_v2  ;;  %v87_v5 = vld [vmem:[#allocation2 + $0xd0] sm:$0xff]  ;;  %v86_v6 = vld [vmem:[#allocation2 + $0xc8] sm:$0xff]  ;;  %v85_v7 = vld [vmem:[#allocation2 + $0xc0] sm:$0xff]  ;;  %s318_s28 = sshll.u32 %s428_s27, 4  ;;  %s319_s28 = int_to_ptr.vmem [resolvable:$true] %s318_s28 }
   0xf   :  { %153 = vmatpush.msra.mxu2 %v90_v1  ;;  %v84_v8 = vld [vmem:[#allocation2 + $0xb8] sm:$0xff]  ;;  %v83_v9 = vld [vmem:[#allocation2 + $0xb0] sm:$0xff]  ;;  %v82_v10 = vld [vmem:[#allocation2 + $0xa8] sm:$0xff] }
  0x10   :  { %113 = vmatpush.msra.mxu0 %v89_v4  ;;  %v81_v11 = vld [vmem:[#allocation2 + $0xa0] sm:$0xff]  ;;  %v94_v12 = vld [vmem:[#allocation2 + $0x108] sm:$0x7f]  ;;  %v80_v13 = vld [vmem:[#allocation2 + $0x98] sm:$0xff] }
  0x11   :  { %154 = vmatpush.msra.mxu2 %v88_v3  ;;  %333 = vmatpush.msk.msra.mxu3 %vm105_vm0, %v94_v12  ;;  %v60_v14 = vld [vmem:[%s545_s0 + $0x8] sm:$0xff]  ;;  %v79_v15 = vld [vmem:[#allocation2 + $0x90] sm:$0xff]  ;;  %v93_v16 = vld [vmem:[#allocation2 + $0x100] sm:$0x7f] }
  0x12   :  { %114 = vmatpush.msra.mxu0 %v87_v5  ;;  %334 = vmatmul.msk.f32.vlgmr.msra.gmra.mxu3 %vm101_vm1, %v60_v14  ;;  %v78_v17 = vld [vmem:[#allocation2 + $0x88] sm:$0xff]  ;;  %v77_v20 = vld [vmem:[#allocation2 + $0x80] sm:$0xff]  ;;  %v76_v22 = vld [vmem:[#allocation2 + $0x78] sm:$0xff] }
  0x13   :  { %155 = vmatpush.msra.mxu2 %v86_v6  ;;  %331 = vmatpush.msk.msra.mxu1 %vm105_vm0, %v93_v16  ;;  %v225_v18 = vld [vmem:[#allocation5 + $0xf8] sm:$0xff]  ;;  %v224_v21 = vld [vmem:[#allocation5 + $0xf0] sm:$0xff]  ;;  %v75_v24 = vld [vmem:[#allocation2 + $0x70] sm:$0xff] }
  0x14   :  { %115 = vmatpush.msra.mxu0 %v85_v7  ;;  %v209_v19 = vld [vmem:[#allocation5 + $0x78] sm:$0xff]  ;;  %332 = vmatmul.msk.f32.vlgmr.msra.gmra.mxu1 %vm101_vm1, %v60_v14  ;;  %v208_v23 = vld [vmem:[#allocation5 + $0x70] sm:$0xff]  ;;  %v223_v25 = vld [vmem:[#allocation5 + $0xe8] sm:$0xff] }
  0x15   :  { %156 = vmatpush.msra.mxu2 %v84_v8  ;;  %250 = vmatpush.msrb.mxu3 %v225_v18  ;;  %v74_v26 = vld [vmem:[#allocation2 + $0x68] sm:$0xff]  ;;  %v207_v27 = vld [vmem:[#allocation5 + $0x68] sm:$0xff]  ;;  %v73_v28 = vld [vmem:[#allocation2 + $0x60] sm:$0xff] }
  0x16   :  { %116 = vmatpush.msra.mxu0 %v83_v9  ;;  %230 = vmatpush.msrb.mxu1 %v209_v19  ;;  %v222_v29 = vld [vmem:[#allocation5 + $0xe0] sm:$0xff]  ;;  %v72_v30 = vld [vmem:[#allocation2 + $0x58] sm:$0xff]  ;;  %v221_v33 = vld [vmem:[#allocation5 + $0xd8] sm:$0xff] }
  0x17   :  { %157 = vmatpush.msra.mxu2 %v82_v10  ;;  %251 = vmatpush.msrb.mxu3 %v224_v21  ;;  %v206_v31 = vld [vmem:[#allocation5 + $0x60] sm:$0xff]  ;;  %v70_v34 = vld [vmem:[#allocation2 + $0x48] sm:$0xff]  ;;  %v69_v36 = vld [vmem:[#allocation2 + $0x40] sm:$0xff] }
  0x18   :  { %117 = vmatpush.msra.mxu0 %v81_v11  ;;  %231 = vmatpush.msrb.mxu1 %v208_v23  ;;  %v71_v32 = vld [vmem:[#allocation2 + $0x50] sm:$0xff]  ;;  %v205_v35 = vld [vmem:[#allocation5 + $0x58] sm:$0xff]  ;;  %v220_v37 = vld [vmem:[#allocation5 + $0xd0] sm:$0xff] }
  0x19   :  { %158 = vmatpush.msra.mxu2 %v80_v13  ;;  %252 = vmatpush.msrb.mxu3 %v223_v25  ;;  %v68_v38 = vld [vmem:[#allocation2 + $0x38] sm:$0xff]  ;;  %v204_v39 = vld [vmem:[#allocation5 + $0x50] sm:$0xff]  ;;  %v67_v40 = vld [vmem:[#allocation2 + $0x30] sm:$0xff] }
  0x1a   :  { %118 = vmatpush.msra.mxu0 %v79_v15  ;;  %232 = vmatpush.msrb.mxu1 %v207_v27  ;;  %v219_v41 = vld [vmem:[#allocation5 + $0xc8] sm:$0xff]  ;;  %v66_v42 = vld [vmem:[#allocation2 + $0x28] sm:$0xff]  ;;  %v65_v44 = vld [vmem:[#allocation2 + $0x20] sm:$0xff] }
  0x1b   :  { %159 = vmatpush.msra.mxu2 %v78_v17  ;;  %253 = vmatpush.msrb.mxu3 %v222_v29  ;;  %v203_v43 = vld [vmem:[#allocation5 + $0x48] sm:$0xff]  ;;  %v218_v45 = vld [vmem:[#allocation5 + $0xc0] sm:$0xff]  ;;  %v217_v49 = vld [vmem:[#allocation5 + $0xb8] sm:$0xff] }
  0x1c   :  { %119 = vmatpush.msra.mxu0 %v77_v20  ;;  %233 = vmatpush.msrb.mxu1 %v206_v31  ;;  %v64_v46 = vld [vmem:[#allocation2 + $0x18] sm:$0xff]  ;;  %v202_v47 = vld [vmem:[#allocation5 + $0x40] sm:$0xff]  ;;  %v62_v50 = vld [vmem:[#allocation2 + $0x8] sm:$0xff] }
  0x1d   :  { %160 = vmatpush.msra.mxu2 %v76_v22  ;;  %254 = vmatpush.msrb.mxu3 %v221_v33  ;;  %v63_v48 = vld [vmem:[#allocation2 + $0x10] sm:$0xff]  ;;  %v201_v51 = vld [vmem:[#allocation5 + $0x38] sm:$0xff]  ;;  %v59_v52 = vld [vmem:[%s545_s0] sm:$0xff] }
  0x1e   :  { %120 = vmatpush.msra.mxu0 %v75_v24  ;;  %234 = vmatpush.msrb.mxu1 %v205_v35  ;;  %v61_v53 = vld [vmem:[#allocation2] sm:$0xff]  ;;  %v215_v56 = vld [vmem:[#allocation5 + $0xa8] sm:$0xff]  ;;  %v214_v57 = vld [vmem:[#allocation5 + $0xa0] sm:$0xff] }
  0x1f   :  { %161 = vmatpush.msra.mxu2 %v74_v26  ;;  %255 = vmatpush.msrb.mxu3 %v220_v37  ;;  %v216_v54 = vld [vmem:[#allocation5 + $0xb0] sm:$0xff]  ;;  %v199_v58 = vld [vmem:[#allocation5 + $0x28] sm:$0xff]  ;;  %v213_v59 = vld [vmem:[#allocation5 + $0x98] sm:$0xff] }
  0x20   :  { %121 = vmatpush.msra.mxu0 %v73_v28  ;;  %235 = vmatpush.msrb.mxu1 %v204_v39  ;;  %v200_v55 = vld [vmem:[#allocation5 + $0x30] sm:$0xff]  ;;  %v198_v60 = vld [vmem:[#allocation5 + $0x20] sm:$0xff]  ;;  %v197_v62 = vld [vmem:[#allocation5 + $0x18] sm:$0xff] }
  0x21   :  { %162 = vmatpush.msra.mxu2 %v72_v30  ;;  %256 = vmatpush.msrb.mxu3 %v219_v41  ;;  %v212_v61 = vld [vmem:[#allocation5 + $0x90] sm:$0xff]  ;;  %v211_v63 = vld [vmem:[#allocation5 + $0x88] sm:$0xff]  ;;  %v210_v1 = vld [vmem:[#allocation5 + $0x80] sm:$0xff] }
  0x22   :  { %122 = vmatpush.msra.mxu0 %v71_v32  ;;  %236 = vmatpush.msrb.mxu1 %v203_v43  ;;  %v196_v0 = vld [vmem:[#allocation5 + $0x10] sm:$0xff]  ;;  %v195_v2 = vld [vmem:[#allocation5 + $0x8] sm:$0xff]  ;;  %v194_v3 = vld [vmem:[#allocation5] sm:$0xff] }
  0x23   :  { %163 = vmatpush.msra.mxu2 %v70_v34  ;;  %257 = vmatpush.msrb.mxu3 %v218_v45  ;;  %v286_v4 = vld [vmem:[%s550_s5 + $0x78] sm:$0xff]  ;;  %v285_v5 = vld [vmem:[%s550_s5 + $0x70] sm:$0xff]  ;;  %v284_v6 = vld [vmem:[%s550_s5 + $0x68] sm:$0xff] }
  0x24   :  { %123 = vmatpush.msra.mxu0 %v69_v36  ;;  %237 = vmatpush.msrb.mxu1 %v202_v47  ;;  %v283_v7 = vld [vmem:[%s550_s5 + $0x60] sm:$0xff]  ;;  %v282_v8 = vld [vmem:[%s550_s5 + $0x58] sm:$0xff]  ;;  %v281_v9 = vld [vmem:[%s550_s5 + $0x50] sm:$0xff] }
  0x25   :  { %164 = vmatpush.msra.mxu2 %v68_v38  ;;  %258 = vmatpush.msrb.mxu3 %v217_v49  ;;  %v280_v10 = vld [vmem:[%s550_s5 + $0x48] sm:$0xff]  ;;  %v279_v11 = vld [vmem:[%s550_s5 + $0x40] sm:$0xff]  ;;  %v278_v12 = vld [vmem:[%s550_s5 + $0x38] sm:$0xff] }
  0x26   :  { %124 = vmatpush.msra.mxu0 %v67_v40  ;;  %238 = vmatpush.msrb.mxu1 %v201_v51  ;;  %v95_v13 = vld [vmem:[%s547_s2] sm:$0x3]  ;;  %v277_v14 = vld [vmem:[%s550_s5 + $0x30] sm:$0xff]  ;;  %v276_v16 = vld [vmem:[%s550_s5 + $0x28] sm:$0xff] }
  0x27   :  { %165 = vmatpush.msra.mxu2 %v66_v42  ;;  %259 = vmatpush.msrb.mxu3 %v216_v54  ;;  %v97_v15 = vperm.slane %v95_v13, 0  ;;  %v275_v19 = vld [vmem:[%s550_s5 + $0x20] sm:$0xff]  ;;  %v98_v21 = vperm.slane %v95_v13, 1  ;;  %v274_v29 = vld [vmem:[%s550_s5 + $0x18] sm:$0xff]  ;;  %v273_v30 = vld [vmem:[%s550_s5 + $0x10] sm:$0xff] }
  0x28   :  { %125 = vmatpush.msra.mxu0 %v65_v44  ;;  %239 = vmatpush.msrb.mxu1 %v200_v55  ;;  %v272_v31 = vld [vmem:[%s550_s5 + $0x8] sm:$0xff]  ;;  %v271_v32 = vld [vmem:[%s550_s5] sm:$0xff]  ;;  %s320_s5 = sshll.u32 %s552_s7, 4  ;;  %s321_s5 = int_to_ptr.hbm [resolvable:$true] %s320_s5 }
  0x29   :  { %166 = vmatpush.msra.mxu2 %v64_v46  ;;  %260 = vmatpush.msrb.mxu3 %v215_v56  ;;  %v342_v33 = vld [vmem:[%s549_s4] ss:$0 sm:$0xff] }
  0x2a   :  { %126 = vmatpush.msra.mxu0 %v63_v48  ;;  %240 = vmatpush.msrb.mxu1 %v199_v58  ;;  %v343_v39 = vld [vmem:[%s551_s6] ss:$0 sm:$0xff] }
  0x2b   :  { %167 = vmatpush.msra.mxu2 %v62_v50  ;;  %261 = vmatpush.msrb.mxu3 %v214_v57 }
  0x2c   :  { %168 = vmatmul.f32.vlgmr.msra.gmra.mxu2 %v59_v52  ;;  %127 = vmatpush.msra.mxu0 %v61_v53 }
  0x2d   :  { %128 = vmatmul.f32.vlgmr.msra.gmra.mxu0 %v59_v52  ;;  %262 = vmatpush.msrb.mxu3 %v213_v59 }
  0x2e   :  { %241 = vmatpush.msrb.mxu1 %v198_v60  ;;  %291 = vmatpush.msrb.mxu0 %v286_v4 }
  0x2f   :  { %263 = vmatpush.msrb.mxu3 %v212_v61 }
  0x30   :  { %242 = vmatpush.msrb.mxu1 %v197_v62  ;;  %292 = vmatpush.msrb.mxu0 %v285_v5 }
  0x31   :  { %264 = vmatpush.msrb.mxu3 %v211_v63 }
  0x32   :  { %243 = vmatpush.msrb.mxu1 %v196_v0  ;;  %293 = vmatpush.msrb.mxu0 %v284_v6 }
  0x33   :  { %265 = vmatpush.msrb.mxu3 %v210_v1 }
  0x34   :  { %244 = vmatpush.msrb.mxu1 %v195_v2  ;;  %294 = vmatpush.msrb.mxu0 %v283_v7 }
  0x36   :  { %245 = vmatpush.msrb.mxu1 %v194_v3  ;;  %295 = vmatpush.msrb.mxu0 %v282_v8 }
  0x38   :  { %296 = vmatpush.msrb.mxu0 %v281_v9 }
  0x3a   :  { %297 = vmatpush.msrb.mxu0 %v280_v10 }
  0x3c   :  { %298 = vmatpush.msrb.mxu0 %v279_v11 }
  0x3e   :  { %299 = vmatpush.msrb.mxu0 %v278_v12 }
  0x40   :  { %300 = vmatpush.msrb.mxu0 %v277_v14 }
  0x42   :  { %301 = vmatpush.msrb.mxu0 %v276_v16 }
  0x44   :  { %302 = vmatpush.msrb.mxu0 %v275_v19 }
  0x46   :  { %303 = vmatpush.msrb.mxu0 %v274_v29 }
  0x48   :  { %304 = vmatpush.msrb.mxu0 %v273_v30 }
  0x4a   :  { %305 = vmatpush.msrb.mxu0 %v272_v31 }
  0x4c   :  { %306 = vmatpush.msrb.mxu0 %v271_v32 }
  0x91   :  { %v149_v18 = vpop.f32.mrf.mxu1 }
  0x95   :  { %v189_v24 = vpop.f32.mrf.mxu3 }
  0xaa   :  { %v129_v17 = vpop.f32.mrf.mxu0 }
  0xab   :  { %v130_v20 = vadd.f32 %v129_v17, %v97_v15 }
  0xad   :  { %v150_v22 = vadd.f32 %v149_v18, %v130_v20 }
  0xaf   :  { %v169_v23 = vpop.f32.mrf.mxu2  ;;  %v192_v25 = vmax.f32 %v150_v22, 0.0 }
  0xb0   :  { %v170_v26 = vadd.f32 %v169_v23, %v98_v21 }
  0xb1   :  { %246 = vmatmul.f32.vlgmr.msrb.gmra.mxu1 %v192_v25 }
  0xb2   :  { %v190_v27 = vadd.f32 %v189_v24, %v170_v26 }
  0xb4   :  { %v193_v28 = vmax.f32 %v190_v27, 0.0 }
  0xb6   :  { %266 = vmatmul.f32.vlgmr.msrb.gmra.mxu3 %v193_v28 }
 0x12e   :  { %v247_v34 = vpop.f32.mrf.mxu1 }
 0x12f   :  { %v248_v35 = vadd.f32 %v342_v33, %v247_v34 }
 0x139   :  { %v267_v36 = vpop.f32.mrf.mxu3 }
 0x13a   :  { %v268_v37 = vadd.f32 %v267_v36, %v248_v35 }
 0x13c   :  { %v270_v38 = vmax.f32 %v268_v37, 0.0 }
 0x13e   :  { %307 = vmatmul.f32.vlgmr.msrb.gmra.mxu0 %v270_v38 }
 0x1bb   :  { %v308_v40 = vpop.f32.mrf.mxu0 }
 0x1bc   :  { %v309_v41 = vadd.f32 %v343_v39, %v308_v40 }
 0x1be   :  { %312 = vst.msk [vmem:[#allocation7] sm:$0xff] %vm311_vm2, %v309_v41 }
 0x1bf   :  { %323 = dma.vmem_to_hbm [thread:$0]  %s319_s28, 128, %s321_s5, [#allocation4]  }
 0x1c0   :  { %420 = dma.done.wait [#allocation4], 128  }
 0x1c1   :  { %421 = vsyncadd [#allocation4], 4294967168 }
 0x1c2   :  { %328 = vsyncpa [#allocation3], 1 }
 0x1c3   :  { %329 = vsyncpa [#allocation6], 1 }
 0x1c4   :  { %330 = vsyncpa [#allocation4], 1 }

</bundles_post_ra>
